<compile_context>
chip_gen: v5e
topology: v5e:2x2
jax: 0.10.0
libtpu: 0.0.40
codegen_flags: <defaults>
</compile_context>

<pallas_src>
import functools

import jax
import jax.numpy as jnp
from jax import lax
from jax.experimental import pallas as pl
from jax.experimental.pallas import tpu as pltpu

IGNORE_INDEX = 255  # NOTE: collides with real class ids if C > 255 (inherent to the module).


def _ce_partial_kernel(logit_ref, target_ref, out_ref, *, num_pixels, needs_col_mask):
    """One (C, TP) pixel-tile of one batch element -> partial loss (broadcast to (1,128))."""
    x = logit_ref[...].astype(jnp.float32)                 # (C, TP)
    t = target_ref[...]                                    # (1, TP) int32
    C, TP = x.shape

    # Numerically stable, single fused pass: the per-pixel max cancels in lse - x[t].
    m = jnp.max(x, axis=0, keepdims=True)                  # (1, TP)
    xm = x - m                                             # (C, TP)
    sum_exp = jnp.sum(jnp.exp(xm), axis=0, keepdims=True)  # (1, TP)

    classes = lax.broadcasted_iota(jnp.int32, (C, TP), 0)  # (C, TP)
    picked_m = jnp.sum(jnp.where(classes == t, xm, 0.0),
                       axis=0, keepdims=True)              # (1, TP) == x[target] - m

    valid = t != IGNORE_INDEX                              # (1, TP)
    if needs_col_mask:  # ragged tail tile: mask pixels past the real image.
        col = pl.program_id(1) * TP + lax.broadcasted_iota(jnp.int32, (1, TP), 1)
        valid = jnp.logical_and(valid, col < num_pixels)

    per_pixel = jnp.where(valid, jnp.log(sum_exp) - picked_m, 0.0)   # (1, TP)
    partial = jnp.sum(per_pixel)                                     # scalar f32
    out_ref[...] = jnp.broadcast_to(partial, out_ref.shape)


def cross_entropy_loss_2d(logit, target, size_average=True, batch_average=True,
                          tile_p=None):
    """logit: (N, C, H, W) float; target: (N, 1, H, W) int (255 = ignore)."""
    # TODO(synk): per-class weight vector (weight != None) is not implemented;
    #             this is the weight=None path of the original module.
    N, C, H, W = logit.shape
    P = H * W

    # Free reshapes: collapse only the contiguous trailing (H, W) axes.
    logit_r = logit.reshape(N, C, P)
    target_r = target.reshape(N, 1, P).astype(jnp.int32)

    if tile_p is None:
        # ~256K logit elements per tile; with double buffering + f32 intermediates
        # this stays at a few MiB of VMEM on every TPU generation.
        target_elems = 256 * 1024
        tile_p = max(128, (target_elems // max(C, 1)) // 128 * 128)
    tile_p = max(128, (tile_p // 128) * 128)   # lane-aligned
    if tile_p >= P:
        tile_p = P                              # single block spanning the pixel axis

    grid_p = pl.cdiv(P, tile_p)
    needs_col_mask = (grid_p * tile_p) != P

    kernel = functools.partial(_ce_partial_kernel,
                               num_pixels=P, needs_col_mask=needs_col_mask)

    partials = pl.pallas_call(
        kernel,
        out_shape=jax.ShapeDtypeStruct((N, grid_p, 1, 128), jnp.float32),
        grid_spec=pltpu.PrefetchScalarGridSpec(
            num_scalar_prefetch=0,
            grid=(N, grid_p),
            in_specs=[
                pl.BlockSpec((None, C, tile_p), lambda n, p: (n, 0, p)),
                pl.BlockSpec((None, 1, tile_p), lambda n, p: (n, 0, p)),
            ],
            out_specs=pl.BlockSpec((None, None, 1, 128), lambda n, p: (n, p, 0, 0)),
        ),
        compiler_params=pltpu.CompilerParams(
            dimension_semantics=("parallel", "parallel"),
            vmem_limit_bytes=32 * 1024 * 1024,
        ),
    )(logit_r, target_r)

    # Each tile's partial is broadcast across the 128 lanes; take lane 0 and sum.
    loss = jnp.sum(partials[..., 0])
    if size_average:
        loss = loss / (H * W)
    if batch_average:
        loss = loss / N
    return loss


if __name__ == "__main__":
    key = jax.random.PRNGKey(0)
    k1, k2, k3 = jax.random.split(key, 3)

    N, C, H, W = 2, 4, 16, 16
    logit = jax.random.normal(k1, (N, C, H, W), dtype=jnp.float32)
    target = jax.random.randint(k2, (N, 1, H, W), 0, C, dtype=jnp.int32)
    # sprinkle some ignore_index pixels
    ignore_mask = jax.random.bernoulli(k3, 0.1, (N, 1, H, W))
    target = jnp.where(ignore_mask, IGNORE_INDEX, target)

    loss = cross_entropy_loss_2d(logit, target)
    jax.block_until_ready(loss)

    # reference check in plain JAX
    lr = jnp.transpose(logit, (0, 2, 3, 1)).reshape(-1, C)
    tr = target.reshape(-1)
    lse = jax.scipy.special.logsumexp(lr, axis=-1)
    picked = jnp.take_along_axis(
        lr, jnp.clip(tr, 0, C - 1)[:, None], axis=-1)[:, 0]
    ref = jnp.sum(jnp.where(tr != IGNORE_INDEX, lse - picked, 0.0)) / (H * W) / N
    assert jnp.allclose(loss, ref, rtol=1e-5, atol=1e-5), (loss, ref)

    print("KERNEL_OK")
</pallas_src>

<mosaic_0001>
module attributes {stable_mosaic.version = 11 : i64} {
  func.func @_ce_partial_kernel(%arg0: i32, %arg1: i32, %arg2: memref<1x4x256xf32, #tpu.memory_space<vmem>>, %arg3: memref<1x1x256xi32, #tpu.memory_space<vmem>>, %arg4: memref<1x1x1x128xf32, #tpu.memory_space<vmem>>) attributes {dimension_semantics = [#tpu.dimension_semantics<parallel>, #tpu.dimension_semantics<parallel>], iteration_bounds = array<i64: 2, 1>, scalar_prefetch = 0 : i64, scratch_operands = 0 : i64, tpu.core_type = #tpu.core_type<tc>, window_params = [{transform_indices = @transform_0, window_bounds = array<i64: 1, 4, 256>}, {transform_indices = @transform_1, window_bounds = array<i64: 1, 1, 256>}, {transform_indices = @transform_2, window_bounds = array<i64: 1, 1, 1, 128>}]} {
    %c0 = arith.constant 0 : index
    %c0_0 = arith.constant 0 : index
    %c0_1 = arith.constant 0 : index
    %0 = vector.load %arg2[%c0, %c0_0, %c0_1] : memref<1x4x256xf32, #tpu.memory_space<vmem>>, vector<1x4x256xf32>
    %1 = vector.shape_cast %0 : vector<1x4x256xf32> to vector<4x256xf32>
    %c0_2 = arith.constant 0 : index
    %c0_3 = arith.constant 0 : index
    %c0_4 = arith.constant 0 : index
    %2 = vector.load %arg3[%c0_2, %c0_3, %c0_4] : memref<1x1x256xi32, #tpu.memory_space<vmem>>, vector<1x1x256xi32>
    %3 = vector.shape_cast %2 : vector<1x1x256xi32> to vector<1x256xi32>
    %cst = arith.constant dense<0xFF800000> : vector<256xf32>
    %4 = vector.multi_reduction <maximumf>, %1, %cst [0] : vector<4x256xf32> to vector<256xf32>
    %5 = vector.shape_cast %4 : vector<256xf32> to vector<1x256xf32>
    %6 = vector.broadcast %5 : vector<1x256xf32> to vector<4x256xf32>
    %7 = arith.subf %1, %6 : vector<4x256xf32>
    %8 = math.exp %7 : vector<4x256xf32>
    %cst_5 = arith.constant dense<0.000000e+00> : vector<256xf32>
    %9 = vector.multi_reduction <add>, %8, %cst_5 [0] : vector<4x256xf32> to vector<256xf32>
    %10 = vector.shape_cast %9 : vector<256xf32> to vector<1x256xf32>
    %11 = tpu.iota {dimensions = array<i32: 0>} : vector<4x256xi32>
    %12 = vector.broadcast %3 : vector<1x256xi32> to vector<4x256xi32>
    %13 = arith.cmpi eq, %11, %12 : vector<4x256xi32>
    %cst_6 = arith.constant 0.000000e+00 : f32
    %14 = vector.broadcast %cst_6 : f32 to vector<4x256xf32>
    %15 = arith.select %13, %7, %14 : vector<4x256xi1>, vector<4x256xf32>
    %cst_7 = arith.constant dense<0.000000e+00> : vector<256xf32>
    %16 = vector.multi_reduction <add>, %15, %cst_7 [0] : vector<4x256xf32> to vector<256xf32>
    %17 = vector.shape_cast %16 : vector<256xf32> to vector<1x256xf32>
    %c255_i32 = arith.constant 255 : i32
    %18 = vector.broadcast %c255_i32 : i32 to vector<1x256xi32>
    %19 = arith.cmpi ne, %3, %18 : vector<1x256xi32>
    %20 = math.log %10 : vector<1x256xf32>
    %21 = arith.subf %20, %17 : vector<1x256xf32>
    %cst_8 = arith.constant 0.000000e+00 : f32
    %22 = vector.broadcast %cst_8 : f32 to vector<1x256xf32>
    %23 = arith.select %19, %21, %22 : vector<1x256xi1>, vector<1x256xf32>
    %24 = vector.shape_cast %23 : vector<1x256xf32> to vector<1x1x256xf32>
    %cst_9 = arith.constant dense<0.000000e+00> : vector<1xf32>
    %25 = vector.multi_reduction <add>, %24, %cst_9 [1, 2] : vector<1x1x256xf32> to vector<1xf32>
    %26 = vector.shape_cast %25 : vector<1xf32> to vector<1x1x1xf32>
    %27 = vector.extract %26[0, 0, 0] : f32 from vector<1x1x1xf32>
    %28 = vector.broadcast %27 : f32 to vector<1x128xf32>
    %c0_10 = arith.constant 0 : index
    %c0_11 = arith.constant 0 : index
    %c0_12 = arith.constant 0 : index
    %c0_13 = arith.constant 0 : index
    %29 = vector.load %arg4[%c0_10, %c0_11, %c0_12, %c0_13] : memref<1x1x1x128xf32, #tpu.memory_space<vmem>>, vector<1x1x1x128xf32>
    %30 = vector.shape_cast %29 : vector<1x1x1x128xf32> to vector<1x128xf32>
    %31 = vector.shape_cast %28 : vector<1x128xf32> to vector<1x1x1x128xf32>
    tpu.vector_store %arg4[%c0_10, %c0_11, %c0_12, %c0_13], %31 {strides = array<i32>} : memref<1x1x1x128xf32, #tpu.memory_space<vmem>>, vector<1x1x1x128xf32>,
    return
  }
  func.func @transform_0(%arg0: i32, %arg1: i32) -> (i32, i32, i32) {
    %c0_i32 = arith.constant 0 : i32
    %c0_i32_0 = arith.constant 0 : i32
    return %arg0, %c0_i32, %arg1 : i32, i32, i32
  }
  func.func @transform_1(%arg0: i32, %arg1: i32) -> (i32, i32, i32) {
    %c0_i32 = arith.constant 0 : i32
    %c0_i32_0 = arith.constant 0 : i32
    return %arg0, %c0_i32, %arg1 : i32, i32, i32
  }
  func.func @transform_2(%arg0: i32, %arg1: i32) -> (i32, i32, i32, i32) {
    %c0_i32 = arith.constant 0 : i32
    %c0_i32_0 = arith.constant 0 : i32
    %c0_i32_1 = arith.constant 0 : i32
    return %arg0, %arg1, %c0_i32, %c0_i32_0 : i32, i32, i32, i32
  }
}

</mosaic_0001>

<bundles_post_ra>
// kernel: tpu_custom_call.1
= control target key start
LH: loop header
LB: loop body
LE: loop exit
PB: predicated region body
PF: predicated region fallthrough
CT: control target
= control target key end

     0   :  { %7 = vsyncpa [#allocation3], 0  ;;  %s852_s0 = inlined_call_operand.hbm [shape: f32[2,4,256], index: 0, kind: input, shape index: {}]   ;;  %s853_s1 = inlined_call_operand.hbm [shape: s32[2,1,256], index: 1, kind: input, shape index: {}]   ;;  %s854_s2 = inlined_call_operand.hbm [shape: f32[2,1,1,128], index: 2, kind: output, shape index: {}]  }
   0x1   :  { %9 = vsyncpa [#allocation3 + $0x1], 0 }
   0x2   :  { %10 = vsyncpa [#allocation6], 0 }
   0x3   :  { %12 = vsyncpa [#allocation6 + $0x1], 0 }
   0x4   :  { %13 = vsyncpa [#allocation4], 0 }
   0x5   :  { %15 = vsyncpa [#allocation4 + $0x1], 0  ;;  %s706_s9 = smov 0   ;;  %s708_s10 = smov 0  }
   0x6   :  { %s710_s11 = smov 0   ;;  %s712_s12 = smov 0  }
   0x7   :  { %s714_s13 = smov 0   ;;  %s716_s14 = smov 0  }
   0x8 LB: > { %s453_s15 = sadd.s32 4294967295, %s689_s14   ;;  %s454_s16 = sadd.s32 4294967294, %s689_s14   ;;  %s689_s14 = sphi %s716_s14, %s21_s14   ;;  %s685_s13 = sphi %s714_s13, %s864_s13   ;;  %s681_s12 = sphi %s712_s12, %s863_s12   ;;  %s677_s11 = sphi %s710_s11, %s862_s11   ;;  %s673_s10 = sphi %s708_s10, %s861_s10   ;;  %s669_s9 = sphi %s706_s9, %s860_s9  }
   0x9   : > { %s33_s17 = sadd.s32 1, %s685_s13  ;;  %s42_s18 = sadd.s32 1, %s677_s11 }
   0xa   : > { %p35_p0 = scmp.ge.s32.totalorder %s33_s17, 2  ;;  %p49_p1 = scmp.ne.s32.totalorder %s677_s11, %s673_s10 }
   0xb   : > { %p50_p2 = scmp.eq.s32.totalorder %s689_s14, 0  ;;  %p55_p3 = scmp.ne.s32.totalorder %s673_s10, %s669_s9 }
   0xc   : > { %s866_s17 = smov (%p35_p0, %s33_s17), 0  ;;  %p56_p5 = scmp.eq.s32.totalorder %s453_s15, 0 }
   0xd   : > { %p747_p4 = por %p50_p2, %p49_p1  ;;  %s37_s20 = ssub.s32 %s685_s13, %s866_s17 }
   0xe   : > { %p109_p6 = scmp.eq.s32.totalorder %s453_s15, 1  ;;  %p40_p7 = scmp.eq.s32.totalorder %s37_s20, 0 }
   0xf   : > { %p753_p8 = por %p56_p5, %p55_p3  ;;  %p115_p10 = scmp.eq.s32.totalorder %s454_s16, 1 }
  0x10   : > { %p757_p9 = por %p109_p6, %p49_p1  ;;  %p456_p12 = scmp.ge.s32.totalorder %s689_s14, 2 }
  0x11   : > { %s762_s23 = scalar_select %p40_p7, %s677_s11, %s42_s18  }
  0x12   : > { %p764_p11 = por %p115_p10, %p55_p3  ;;  %p487_p13 = scmp.lt.s32.totalorder %s689_s14, 2 }
  0x13   : > { %s135_s25 = sand.u32 1, %s677_s11   ;;  %s467_s27 = sshll.u32 %s685_s13, 3 }
  0x14   : > { %s457_s26 = sshll.u32 %s135_s25, 3  ;;  %s146_s30 = scalar_lea.hbm %s852_s0, %s467_s27 }
  0x15   : > { %s139_s3 = scalar_lea.vmem [#allocation2], %s457_s26  ;;  %s148_s5 = sshll.u32 %s146_s30, 4  ;;  %s149_s5 = int_to_ptr.hbm [resolvable:$true] %s148_s5 }
  0x16   : > { %s150_s4 = sshll.u32 %s139_s3, 4  ;;  %p777_p0 = pnand %p487_p13, %p747_p4  ;;  %s151_s4 = int_to_ptr.vmem [resolvable:$true] %s150_s4 }
  0x17   : > { %p462_p1 = scmp.ge.s32.totalorder %s689_s14, 1  ;;  %p176_p2 = scmp.lt.s32.totalorder %s689_s14, 3 }
  0x18   : > { %s136_s7 = scalar_lea.sflag [#allocation3], %s135_s25  ;;  %s460_s8 = sshll.u32 %s135_s25, 1 }
  0x19   : > { %479 = dma.hbm_to_vmem [thread:$0]  (!%p777_p0), %s149_s5, 128, %s151_s4, %s136_s7  }
  0x1a   : > { %p177_p3 = pnand %p462_p1, %p176_p2  ;;  %s461_s15 = sshll.u32 %s685_s13, 1 }
  0x1b   : > { %s167_s20 = scalar_lea.hbm %s853_s1, %s461_s15  ;;  %s161_s26 = scalar_lea.vmem [#allocation5], %s460_s8 }
  0x1c   : > { %s171_s19 = sshll.u32 %s161_s26, 4  ;;  %s169_s27 = sshll.u32 %s167_s20, 4  ;;  %s172_s19 = int_to_ptr.vmem [resolvable:$true] %s171_s19  ;;  %s170_s27 = int_to_ptr.hbm [resolvable:$true] %s169_s27 }
  0x1d   : > { %s158_s28 = scalar_lea.sflag [#allocation6], %s135_s25  ;;  %180 = sbr.rel (%p177_p3) target bundleno = 298 (0x12a), region = 28 }
  0x1e   : > { %482 = dma.hbm_to_vmem [thread:$0]  (!%p777_p0), %s170_s27, 32, %s172_s19, %s158_s28  }
  0x1f   : > { %s792_s29 = sand.u32 (!%p177_p3), 1, %s673_s10  }
  0x20   : > { %s463_s30 = sshll.u32 (!%p177_p3), %s792_s29, 3  ;;  %s183_s3 = scalar_lea.sflag (!%p177_p3), [#allocation3], %s792_s29 }
  0x21   : > { %s186_s4 = scalar_lea.vmem (!%p177_p3), [#allocation2], %s463_s30 }
  0x22   : > { %656 = dma.done.wait (%p753_p8), %s183_s3, 128  }
  0x23   : > { %658 = vsyncadd (%p753_p8), %s183_s3, 4294967168  ;;  %s464_s25 = sshll.u32 %s792_s29, 1  ;;  %s193_s5 = scalar_lea.sflag [#allocation6], %s792_s29 }
  0x24   : > { %s196_s6 = scalar_lea.vmem [#allocation5], %s464_s25 }
  0x25   : > { %660 = dma.done.wait (%p753_p8), %s193_s5, 32  }
  0x26   : > { %662 = vsyncadd (%p753_p8), %s193_s5, 4294967264  ;;  %v224_v0 = vld [vmem:[%s186_s4] sm:$0xff]  ;;  %vm232_vm0 = vcmask 1043456   ;;  %v275_v22 = vlaneseq  ;;  %v225_v23 = vld [vmem:[%s196_s6] sm:$0x3]  ;;  %vm313_vm3 = vcmask 1040384   ;;  %s346_s8 = scalar_lea.hbm %s854_s2, %s681_s12 }
  0x27   : > { %227 = vst [vmem:[#allocation1] ss:$2 sm:$0xff] %v224_v0  ;;  %v277_v31 = vperm.slane %v225_v23, 0  ;;  %v278_v32 = vperm.slane %v225_v23, 1  ;;  %vm303_vm4 = vcmp.ne.s32.totalorder %v225_v23, 255  ;;  %s221_s15 = scalar_lea.vmem [#allocation7], %s792_s29 }
  0x28   : > { %v276_v28 = vshrl.u32 %v275_v22, 7  ;;  %s348_s16 = sshll.u32 %s221_s15, 4  ;;  %s350_s18 = sshll.u32 %s346_s8, 4  ;;  %s349_s16 = int_to_ptr.vmem [resolvable:$true] %s348_s16  ;;  %s351_s18 = int_to_ptr.hbm [resolvable:$true] %s350_s18 }
  0x29   : > { %s337_s26 = scalar_lea.sflag [#allocation4], %s792_s29  ;;  %s617_s19 = sshra.s32 %s351_s18, 4  ;;  %s618_s19 = int_to_ptr.hbm [resolvable:$true] %s617_s19 }
  0x2a   : > { %vm279_vm1 = vcmp.eq.s32.totalorder %v276_v28, %v277_v31  ;;  %vm280_vm2 = vcmp.eq.s32.totalorder %v276_v28, %v278_v32  ;;  %s619_s27 = scalar_lea.hbm %s618_s19, 1  ;;  %s623_s12 = scalar_lea.hbm %s854_s2, 2 }
  0x2b   : > { %p620_p4 = scmp.ne.s32.totalorder %s618_s19, %s619_s27  ;;  %p624_p7 = scmp.lt.s32.totalorder %s618_s19, %s854_s2 }
  0x2c   : > { %p625_p8 = scmp.lt.s32.totalorder %s623_s12, %s619_s27 }
  0x2d   : > { %p621_p5 = pnand %p620_p4, %p757_p9 }
  0x2e   : > { %v228_v1 = vld.sshfl [vmem:[#allocation1] sm:$0xff pattern:$0x75316420]  ;;  %v229_v2 = vld.sshfl [vmem:[#allocation1 + $0x8] sm:$0xff pattern:$0x75316420]  ;;  %p626_p10 = por %p625_p8, %p624_p7 }
  0x2f   : > { %v233_v3 = vsel %vm232_vm0, %v228_v1, -inf  ;;  %v240_v4 = vsel %vm232_vm0, %v229_v2, -inf  ;;  %p622_p6 = pneg %p621_p5 }
  0x30   : > { %v234_v5 = vrot.slane %v233_v3, 4  ;;  %v241_v6 = vrot.slane %v240_v4, 4 }
  0x31   : > { %p627_p13 = pnand %p626_p10, %p622_p6 }
  0x32   : > { %v235_v7 = vmax.f32 %v233_v3, %v234_v5  ;;  %v242_v8 = vmax.f32 %v240_v4, %v241_v6 }
  0x34   : > { %v236_v9 = vrot.slane %v235_v7, 2  ;;  %v243_v10 = vrot.slane %v242_v8, 2 }
  0x36   : > { %v237_v11 = vmax.f32 %v235_v7, %v236_v9  ;;  %v244_v12 = vmax.f32 %v242_v8, %v243_v10 }
  0x38   : > { %v238_v13 = vrot.slane %v237_v11, 1  ;;  %v245_v14 = vrot.slane %v244_v12, 1 }
  0x3a   : > { %v239_v15 = vmax.f32 %v237_v11, %v238_v13  ;;  %v246_v16 = vmax.f32 %v244_v12, %v245_v14 }
  0x3c   : > { %v249_v17 = vrot.slane %v246_v16, 4 }
  0x3e   : > { %v250_v18 = vsel %vm232_vm0, %v239_v15, %v249_v17 }
  0x3f   : > { %v252_v19 = vsub.f32 %v224_v0, %v250_v18 }
  0x41   : > { %v253_v20 = vmul.f32 1.442695, %v252_v19 }
  0x43   : > { %537 = vpow2.f32 %v253_v20 }
  0x49   : > { %v538_v21 = vpop.eup %537 }
  0x4a   : > { %256 = vst [vmem:[#allocation1] ss:$2 sm:$0xff] %v538_v21 }
  0x51   : > { %v257_v24 = vld.sshfl [vmem:[#allocation1] sm:$0xff pattern:$0x75316420]  ;;  %v258_v25 = vld.sshfl [vmem:[#allocation1 + $0x8] sm:$0xff pattern:$0x75316420] }
  0x52   : > { %v261_v26 = vsel %vm232_vm0, %v257_v24, 0.0  ;;  %v268_v27 = vsel %vm232_vm0, %v258_v25, 0.0  ;;  %282 = vst [vmem:[#allocation1] ss:$2 sm:$0xff] %v252_v19 }
  0x53   : > { %v262_v29 = vrot.slane %v261_v26, 4  ;;  %v269_v30 = vrot.slane %v268_v27, 4 }
  0x55   : > { %v263_v33 = vadd.f32 %v262_v29, %v261_v26  ;;  %v270_v34 = vadd.f32 %v269_v30, %v268_v27 }
  0x57   : > { %v264_v35 = vrot.slane %v263_v33, 2  ;;  %v271_v36 = vrot.slane %v270_v34, 2 }
  0x59   : > { %v265_v37 = vadd.f32 %v264_v35, %v263_v33  ;;  %v272_v38 = vadd.f32 %v271_v36, %v270_v34  ;;  %v283_v39 = vld.sshfl [vmem:[#allocation1] sm:$0xff pattern:$0x75316420]  ;;  %v284_v40 = vld.sshfl [vmem:[#allocation1 + $0x8] sm:$0xff pattern:$0x75316420] }
  0x5a   : > { %v287_v41 = vsel %vm279_vm1, %v283_v39, 0.0  ;;  %v288_v42 = vsel %vm280_vm2, %v284_v40, 0.0 }
  0x5b   : > { %v266_v43 = vrot.slane %v265_v37, 1  ;;  %v273_v44 = vrot.slane %v272_v38, 1  ;;  %v289_v45 = vsel %vm232_vm0, %v287_v41, 0.0  ;;  %v296_v46 = vsel %vm232_vm0, %v288_v42, 0.0 }
  0x5c   : > { %v290_v47 = vrot.slane %v289_v45, 4  ;;  %v297_v48 = vrot.slane %v296_v46, 4 }
  0x5d   : > { %v267_v49 = vadd.f32 %v266_v43, %v265_v37  ;;  %v274_v50 = vadd.f32 %v273_v44, %v272_v38 }
  0x5e   : > { %v291_v51 = vadd.f32 %v290_v47, %v289_v45  ;;  %v298_v52 = vadd.f32 %v297_v48, %v296_v46 }
  0x5f   : > { %539 = vlog2.f32 %v267_v49 }
  0x60   : > { %v292_v53 = vrot.slane %v291_v51, 2  ;;  %v299_v54 = vrot.slane %v298_v52, 2  ;;  %541 = vlog2.f32 %v274_v50 }
  0x62   : > { %v293_v55 = vadd.f32 %v292_v53, %v291_v51  ;;  %v300_v56 = vadd.f32 %v299_v54, %v298_v52 }
  0x64   : > { %v294_v57 = vrot.slane %v293_v55, 1  ;;  %v301_v58 = vrot.slane %v300_v56, 1 }
  0x65   : > { %v540_v59 = vpop.eup %539 }
  0x66   : > { %v542_v60 = vpop.eup %541  ;;  %v295_v61 = vadd.f32 %v294_v57, %v293_v55  ;;  %v302_v62 = vadd.f32 %v301_v58, %v300_v56  ;;  %v305_v63 = vmul.f32 0.6931472, %v540_v59 }
  0x67   : > { %v307_v0 = vmul.f32 0.6931472, %v542_v60 }
  0x68   : > { %v308_v1 = vsub.f32 %v305_v63, %v295_v61 }
  0x69   : > { %v309_v2 = vsub.f32 %v307_v0, %v302_v62 }
  0x6b   : > { %v312_v3 = vrot.slane %v309_v2, 7 }
  0x6d   : > { %v314_v4 = vsel %vm313_vm3, %v308_v1, %v312_v3 }
  0x6e   : > { %v316_v5 = vsel %vm303_vm4, %v314_v4, 0.0 }
  0x6f   : > { %v318_v6 = vperm.slane %v316_v5, 0  ;;  %v319_v7 = vperm.slane %v316_v5, 1 }
  0x71   : > { %v322_v8 = vsel %vm313_vm3, %v318_v6, 0.0  ;;  %v323_v9 = vsel %vm313_vm3, %v319_v7, 0.0 }
  0x72   : > { %v324_v10 = vadd.f32 %v323_v9, %v322_v8 }
  0x74   : > { %325 = vadd.xlane.f32.xlu0 %v324_v10 }
  0xe7   : > { %v326_v11 = vpop.xlane.xlu0 %325 }
  0xe8   : > { %v327_v12 = vrot.slane %v326_v11, 4 }
  0xea   : > { %v328_v13 = vadd.f32 %v327_v12, %v326_v11 }
  0xec   : > { %v329_v14 = vrot.slane %v328_v13, 2 }
  0xee   : > { %v330_v15 = vadd.f32 %v329_v14, %v328_v13 }
  0xf0   : > { %v331_v16 = vrot.slane %v330_v15, 1 }
  0xf2   : > { %v332_v17 = vadd.f32 %v331_v16, %v330_v15 }
  0xf4   : > { %468 = vpush %v332_v17 }
 0x125   : > { %s469_s20 = spop %468 }
 0x126   : > { %v334_v18 = vstv %s469_s20 }
 0x127   : > { %335 = vst [vmem:[%s221_s15] sm:$0x1] %v334_v18 }
 0x128   : > { %630 = shalt.err (!%p627_p13)
}
 0x129   : > { %474 = dma.vmem_to_hbm [thread:$0]  (%p757_p9), %s349_s16, 16, %s351_s18, %s337_s26  }
 0x12a PF: > { %s362_s29 = sand.u32 1, %s669_s9   ;;  %p484_p0 = pnand %p456_p12, %p764_p11 }
 0x12b   : > { %s363_s25 = scalar_lea.sflag [#allocation4], %s362_s29 }
 0x12c   : > { %p485_p1 = pneg %p484_p0 }
 0x12e   : > { %664 = dma.done.wait (%p485_p1), %s363_s25, 16  }
 0x12f   : > { %666 = vsyncadd (%p485_p1), %s363_s25, 4294967280  ;;  %s21_s14 = sadd.s32 1, %s689_s14   ;;  %s860_s9 = smov %s673_s10 }
 0x130   : > { %p18_p2 = scmp.ge.s32.totalorder %s21_s14, 4   ;;  %s861_s10 = smov %s677_s11 }
 0x131   : > { %s862_s11 = smov %s762_s23  ;;  %s863_s12 = smov %s685_s13 }
 0x132   : > { %s864_s13 = smov %s866_s17  ;;  %20 = sbr.rel (!%p18_p2) target bundleno = 8 (0x8), region = 86 }
 0x137   :  { %368 = vsyncpa [#allocation3], 1 }
 0x138   :  { %370 = vsyncpa [#allocation3 + $0x1], 1 }
 0x139   :  { %371 = vsyncpa [#allocation6], 1 }
 0x13a   :  { %373 = vsyncpa [#allocation6 + $0x1], 1 }
 0x13b   :  { %374 = vsyncpa [#allocation4], 1 }
 0x13c   :  { %376 = vsyncpa [#allocation4 + $0x1], 1 }

</bundles_post_ra>
